<compile_context>
chip_gen: v6e
topology: v6e:2x2x1
jax: 0.10.0
libtpu: 0.0.40
codegen_flags: <defaults>
</compile_context>

<pallas_src>
import math
from functools import lru_cache, partial

import jax
import jax.numpy as jnp
from jax.experimental import pallas as pl
from jax.experimental.pallas import tpu as pltpu


# ------------------------------ constants --------------------------------- #

_LANE = 128
_SUBLANE = 8
_SMALL_NUMEL = 16_384          # below this, plain XLA fusion beats a kernel launch
_TILE_TARGET = 1 << 20         # ~1 MiB per fused-param per buffer
_VMEM_BUDGET = 12 << 20        # total budget for double-buffered in+out buffers
_VMEM_LIMIT = 32 << 20         # explicit scoped-VMEM limit (safe on v5e/v6e/v7x)


# ----------------------------- scaling math -------------------------------- #

def _scale_expr(x, mode, lo, hi):
    """Elementwise scaling math on an f32 array (mode / range are static).

    Used both inside the Pallas kernel (on a tile) and directly as a jnp
    expression for tiny parameters that bypass Pallas.
    """
    if mode == "sigmoid":
        # p * (hi - lo) + lo
        return x * jnp.float32(hi - lo) + jnp.float32(lo)
    if mode == "freq_sigmoid":
        # util.unit_to_hz(p, lo, hi): geometric interpolation lo * (hi/lo)**p
        return jnp.float32(lo) * jnp.exp(x * jnp.float32(math.log(hi / lo)))
    if mode == "exp_sigmoid":
        # util.exp_scale(p, log(10), hi, 1e-7 + lo) = hi * p**log(10) + 1e-7 + lo
        # NOTE: the max() guard keeps log finite; for out-of-domain negative
        # inputs this returns a finite value where the reference pow() would
        # return NaN (documented divergence, inputs are in [0, 1] by contract).
        e = jnp.float32(math.log(10.0))
        xg = jnp.maximum(x, jnp.float32(1e-30))
        return jnp.float32(hi) * jnp.exp(e * jnp.log(xg)) + jnp.float32(1e-7 + lo)
    raise ValueError(f"bad scale mode {mode}")


# ----------------------------- Pallas kernel ------------------------------- #

def _fused_scale_kernel(*refs, specs):
    """One grid step: apply each fused parameter's static scaling to its tile."""
    n = len(specs)
    in_refs, out_refs = refs[:n], refs[n:]
    for (mode, lo, hi), x_ref, o_ref in zip(specs, in_refs, out_refs):
        x = x_ref[...].astype(jnp.float32)
        o_ref[...] = _scale_expr(x, mode, lo, hi).astype(o_ref.dtype)


def _plan_layout(numel, n_params, itemsize):
    """Plan a dense, padded 2-D layout for a flattened parameter group.

    Returns (rows_total, cols, block_rows): the group is reshaped to
    (rows_total, cols) (padded with zeros) and tiled as (block_rows, cols)
    blocks over a 1-D "parallel" grid.
    """
    # Lane axis: widest power-of-two multiple of 128 that still leaves at
    # least 8 sublane-dense rows of real data.
    cols = _LANE
    for c in (4096, 2048, 1024, 512, 256, 128):
        if pl.cdiv(numel, c) >= _SUBLANE:
            cols = c
            break
    rows_data = pl.cdiv(numel, cols)

    # Rows per block: target ~1 MiB / param / buffer, capped by a conservative
    # total VMEM budget (double-buffered input+output for every fused param),
    # accounted at the *input* dtype (the f32 upcast lives in vregs only).
    row_bytes = cols * itemsize
    target_rows = max(_SUBLANE, (_TILE_TARGET // row_bytes) // _SUBLANE * _SUBLANE)
    budget_rows = max(
        _SUBLANE,
        (_VMEM_BUDGET // (2 * 2 * n_params * row_bytes)) // _SUBLANE * _SUBLANE)
    block_rows = min(target_rows, budget_rows,
                     pl.cdiv(rows_data, _SUBLANE) * _SUBLANE)

    # v7x megacore: prefer >= 2 grid steps once the group is >= ~1 MiB / param.
    if (rows_data <= block_rows
            and rows_data * row_bytes >= (1 << 20)
            and block_rows >= 2 * _SUBLANE):
        block_rows = max(_SUBLANE, (block_rows // 2) // _SUBLANE * _SUBLANE)

    rows_total = pl.cdiv(rows_data, block_rows) * block_rows
    return rows_total, cols, block_rows


@lru_cache(maxsize=None)
def _build_fused_scaler(specs, rows_total, cols, block_rows, dtype_name):
    """Build (and cache) one fused pallas_call for a parameter group."""
    dtype = jnp.dtype(dtype_name)
    n = len(specs)
    grid = (rows_total // block_rows,)
    blk = pl.BlockSpec((block_rows, cols), lambda i: (i, 0))
    return pl.pallas_call(
        partial(_fused_scale_kernel, specs=specs),
        out_shape=tuple(jax.ShapeDtypeStruct((rows_total, cols), dtype)
                        for _ in range(n)),
        grid_spec=pl.GridSpec(
            grid=grid,
            in_specs=[blk] * n,
            out_specs=[blk] * n,
        ),
        compiler_params=pltpu.CompilerParams(
            dimension_semantics=("parallel",),
            vmem_limit_bytes=_VMEM_LIMIT),
    )


# --------------------------- Processor (JAX port) -------------------------- #

class Processor:
    """JAX/Pallas port of diffsynth.processor.Processor."""

    def __init__(self, name):
        self.name = name
        self.param_sizes = {}
        self.param_range = {}
        self.param_types = {}
        self.is_gen = False

    def scale_params(self, params, scaled_params):
        scaled = {}
        pending = []                              # (key, mode, lo, hi)
        for k in params.keys():
            if k not in self.param_sizes:
                raise ValueError(f"Specified non-existent parameter {self.name}: {k}")
            scale_type = self.param_types[k]
            p_range = self.param_range[k]
            if scale_type == "raw" or k in scaled_params:
                scaled[k] = params[k]             # passthrough: no kernel, no copy
            elif scale_type in ("sigmoid", "freq_sigmoid", "exp_sigmoid"):
                x = params[k]
                lo, hi = float(p_range[0]), float(p_range[1])
                if x.size < _SMALL_NUMEL:
                    # Tiny tensors: plain jnp (XLA fusion) beats kernel dispatch.
                    scaled[k] = _scale_expr(
                        x.astype(jnp.float32), scale_type, lo, hi).astype(x.dtype)
                else:
                    pending.append((k, scale_type, lo, hi))
            else:
                raise ValueError(
                    f"Incorrect parameter scaling settings for {self.name}: {k}")

        # Group large parameters by (numel, dtype): one fused pallas_call each.
        groups = {}
        for k, mode, lo, hi in pending:
            x = params[k]
            gkey = (int(x.size), jnp.dtype(x.dtype).name)
            groups.setdefault(gkey, []).append((k, mode, lo, hi))

        for (numel, dtype_name), items in groups.items():
            itemsize = jnp.dtype(dtype_name).itemsize
            rows_total, cols, block_rows = _plan_layout(numel, len(items), itemsize)
            padded = rows_total * cols
            specs = tuple((m, lo, hi) for _, m, lo, hi in items)
            fn = _build_fused_scaler(specs, rows_total, cols, block_rows, dtype_name)

            ins = []
            for k, *_ in items:
                flat = params[k].reshape(-1)
                if padded != numel:
                    flat = jnp.pad(flat, (0, padded - numel))
                ins.append(flat.reshape(rows_total, cols))
            outs = fn(*ins)
            for (k, *_), o in zip(items, outs):
                scaled[k] = o.reshape(-1)[:numel].reshape(params[k].shape)
        return scaled

    def process(self, params, n_samples, scaled_params):
        params = self.scale_params(params, scaled_params)
        return self(params, n_samples)

    def __call__(self, params, n_samples):
        raise NotImplementedError


class DemoProcessor(Processor):
    """Concrete subclass used only to exercise process(); forward is identity."""

    def __init__(self, name="demo"):
        super().__init__(name)
        self.param_sizes = {"amp": 1, "cutoff": 1, "freq": 1, "mix": 1, "phase": 1}
        self.param_range = {"amp": (0.0, 2.0), "cutoff": (20.0, 8000.0),
                            "freq": (30.0, 12000.0), "mix": (-1.0, 1.0),
                            "phase": (0.0, 1.0)}
        self.param_types = {"amp": "exp_sigmoid", "cutoff": "freq_sigmoid",
                            "freq": "freq_sigmoid", "mix": "sigmoid",
                            "phase": "raw"}

    def __call__(self, params, n_samples):
        # Scaled params pass through unchanged (base forward is abstract).
        return params


# --------------------------- reference (pure JAX) -------------------------- #

def _ref_scale(x, mode, lo, hi):
    x = x.astype(jnp.float32)
    if mode == "raw":
        return x
    if mode == "sigmoid":
        return x * (hi - lo) + lo
    if mode == "freq_sigmoid":
        return lo * (hi / lo) ** x
    if mode == "exp_sigmoid":
        return hi * x ** math.log(10.0) + (1e-7 + lo)
    raise ValueError(mode)


if __name__ == "__main__":
    n_samples = 1024
    key = jax.random.PRNGKey(0)
    keys = jax.random.split(key, 5)
    params = {
        # Fused Pallas group (same numel/dtype, aligned, no padding needed):
        "amp":    jax.random.uniform(keys[0], (16, 1024), jnp.float32, 1e-4, 1.0),
        "cutoff": jax.random.uniform(keys[1], (16, 1024), jnp.float32, 0.0, 1.0),
        # Pallas group with a ragged size (exercises pad + slice path):
        "freq":   jax.random.uniform(keys[2], (5, 5000), jnp.float32, 0.0, 1.0),
        # Tiny params: jnp fast path / raw passthrough:
        "mix":    jax.random.uniform(keys[3], (8, 256), jnp.float32, 0.0, 1.0),
        "phase":  jax.random.uniform(keys[4], (8, 256), jnp.float32, 0.0, 1.0),
    }

    proc = DemoProcessor("demo")
    out = proc.process(params, n_samples, scaled_params=[])
    out = jax.tree_util.tree_map(jax.block_until_ready, out)

    # Correctness check against a pure-JAX reference of the scaling math.
    for k in params:
        lo, hi = proc.param_range[k]
        ref = _ref_scale(params[k], proc.param_types[k], lo, hi)
        assert out[k].shape == params[k].shape, k
        assert jnp.allclose(out[k], ref, rtol=1e-4, atol=1e-5), k

    # 'raw' parameters must be passed through without touching a kernel.
    assert out["phase"] is params["phase"]

    # Repeated call hits the cached pallas_calls (no rebuild/retrace).
    out2 = proc.process(params, n_samples, scaled_params=[])
    jax.tree_util.tree_map(jax.block_until_ready, out2)

    print("KERNEL_OK")
</pallas_src>

<mosaic_0001>
module attributes {stable_mosaic.version = 11 : i64} {
  func.func @_fused_scale_kernel(%arg0: i32, %arg1: memref<8x2048xf32, #tpu.memory_space<vmem>>, %arg2: memref<8x2048xf32, #tpu.memory_space<vmem>>, %arg3: memref<8x2048xf32, #tpu.memory_space<vmem>>, %arg4: memref<8x2048xf32, #tpu.memory_space<vmem>>) attributes {dimension_semantics = [#tpu.dimension_semantics<parallel>], iteration_bounds = array<i64: 1>, scalar_prefetch = 0 : i64, scratch_operands = 0 : i64, tpu.core_type = #tpu.core_type<tc>, window_params = [{transform_indices = @transform_0, window_bounds = array<i64: 8, 2048>}, {transform_indices = @transform_1, window_bounds = array<i64: 8, 2048>}, {transform_indices = @transform_2, window_bounds = array<i64: 8, 2048>}, {transform_indices = @transform_3, window_bounds = array<i64: 8, 2048>}]} {
    %c0 = arith.constant 0 : index
    %c0_0 = arith.constant 0 : index
    %0 = vector.load %arg1[%c0, %c0_0] : memref<8x2048xf32, #tpu.memory_space<vmem>>, vector<8x2048xf32>
    %cst = arith.constant 1.000000e-30 : f32
    %1 = vector.broadcast %cst : f32 to vector<8x2048xf32>
    %2 = arith.maximumf %0, %1 : vector<8x2048xf32>
    %3 = math.log %2 : vector<8x2048xf32>
    %cst_1 = arith.constant 2.30258512 : f32
    %4 = vector.broadcast %cst_1 : f32 to vector<8x2048xf32>
    %5 = arith.mulf %4, %3 : vector<8x2048xf32>
    %6 = math.exp %5 : vector<8x2048xf32>
    %cst_2 = arith.constant 2.000000e+00 : f32
    %7 = vector.broadcast %cst_2 : f32 to vector<8x2048xf32>
    %8 = arith.mulf %7, %6 : vector<8x2048xf32>
    %cst_3 = arith.constant 1.000000e-07 : f32
    %9 = vector.broadcast %cst_3 : f32 to vector<8x2048xf32>
    %10 = arith.addf %8, %9 : vector<8x2048xf32>
    %c0_4 = arith.constant 0 : index
    %c0_5 = arith.constant 0 : index
    %11 = vector.load %arg3[%c0_4, %c0_5] : memref<8x2048xf32, #tpu.memory_space<vmem>>, vector<8x2048xf32>
    tpu.vector_store %arg3[%c0_4, %c0_5], %10 {strides = array<i32>} : memref<8x2048xf32, #tpu.memory_space<vmem>>, vector<8x2048xf32>,
    %c0_6 = arith.constant 0 : index
    %c0_7 = arith.constant 0 : index
    %12 = vector.load %arg2[%c0_6, %c0_7] : memref<8x2048xf32, #tpu.memory_space<vmem>>, vector<8x2048xf32>
    %cst_8 = arith.constant 5.99146461 : f32
    %13 = vector.broadcast %cst_8 : f32 to vector<8x2048xf32>
    %14 = arith.mulf %12, %13 : vector<8x2048xf32>
    %15 = math.exp %14 : vector<8x2048xf32>
    %cst_9 = arith.constant 2.000000e+01 : f32
    %16 = vector.broadcast %cst_9 : f32 to vector<8x2048xf32>
    %17 = arith.mulf %16, %15 : vector<8x2048xf32>
    %c0_10 = arith.constant 0 : index
    %c0_11 = arith.constant 0 : index
    %18 = vector.load %arg4[%c0_10, %c0_11] : memref<8x2048xf32, #tpu.memory_space<vmem>>, vector<8x2048xf32>
    tpu.vector_store %arg4[%c0_10, %c0_11], %17 {strides = array<i32>} : memref<8x2048xf32, #tpu.memory_space<vmem>>, vector<8x2048xf32>,
    return
  }
  func.func @transform_0(%arg0: i32) -> (i32, i32) {
    %c0_i32 = arith.constant 0 : i32
    %c0_i32_0 = arith.constant 0 : i32
    return %arg0, %c0_i32 : i32, i32
  }
  func.func @transform_1(%arg0: i32) -> (i32, i32) {
    %c0_i32 = arith.constant 0 : i32
    %c0_i32_0 = arith.constant 0 : i32
    return %arg0, %c0_i32 : i32, i32
  }
  func.func @transform_2(%arg0: i32) -> (i32, i32) {
    %c0_i32 = arith.constant 0 : i32
    %c0_i32_0 = arith.constant 0 : i32
    return %arg0, %c0_i32 : i32, i32
  }
  func.func @transform_3(%arg0: i32) -> (i32, i32) {
    %c0_i32 = arith.constant 0 : i32
    %c0_i32_0 = arith.constant 0 : i32
    return %arg0, %c0_i32 : i32, i32
  }
}

</mosaic_0001>

<bundles_post_ra>
// kernel: tpu_custom_call.1
= control target key start
LH: loop header
LB: loop body
LE: loop exit
PB: predicated region body
PF: predicated region fallthrough
CT: control target
= control target key end

     0   :  { %9 = vsyncpa [#allocation3], 0  ;;  %s564_s0 = inlined_call_operand.hbm [shape: f32[8,2048], index: 0, kind: input, shape index: {}]   ;;  %s565_s1 = inlined_call_operand.hbm [shape: f32[8,2048], index: 1, kind: input, shape index: {}]   ;;  %s566_s2 = inlined_call_operand.hbm [shape: f32[8,2048], index: 2, kind: output, shape index: {0}]   ;;  %s567_s3 = inlined_call_operand.hbm [shape: f32[8,2048], index: 3, kind: output, shape index: {1}]  }
   0x1   :  { %10 = vsyncpa [#allocation6], 0 }
   0x2   :  { %11 = vsyncpa [#allocation4], 0 }
   0x3   :  { %12 = vsyncpa [#allocation9], 0  ;;  %s513_s12 = smov [#allocation2]   ;;  %s514_s14 = smov [#allocation5]  }
   0x4   :  { %s19_s13 = sshll.u32 %s513_s12, 4  ;;  %s29_s15 = sshll.u32 %s514_s14, 4  ;;  %s20_s13 = int_to_ptr.vmem [resolvable:$true] %s19_s13  ;;  %s30_s15 = int_to_ptr.vmem [resolvable:$true] %s29_s15 }
   0x5   :  { %s433_s16 = scalar_lea.vmem %s20_s13, 2048  ;;  %p438_p1 = scmp.lt.s32.totalorder %s20_s13, %s20_s13 }
   0x6   :  { %p434_p0 = scmp.ne.s32.totalorder %s20_s13, %s433_s16  ;;  %p439_p2 = scmp.lt.s32.totalorder %s433_s16, %s433_s16 }
   0x8   :  { %p440_p3 = por %p439_p2, %p438_p1 }
   0xa   :  { %p441_p4 = pnand %p440_p3, %p434_p0 }
   0xc   :  { %444 = shalt.err (!%p441_p4)
}
   0xd   :  { %22 = dma.hbm_to_vmem [thread:$0]  %s564_s0, 2048, %s20_s13, [#allocation3]  }
   0xe   :  { %s453_s19 = scalar_lea.vmem %s30_s15, 2048  ;;  %p458_p6 = scmp.lt.s32.totalorder %s30_s15, %s30_s15 }
   0xf   :  { %p454_p5 = scmp.ne.s32.totalorder %s30_s15, %s453_s19  ;;  %p459_p7 = scmp.lt.s32.totalorder %s453_s19, %s453_s19 }
  0x11   :  { %p460_p8 = por %p459_p7, %p458_p6 }
  0x13   :  { %p461_p9 = pnand %p460_p8, %p454_p5 }
  0x15   :  { %464 = shalt.err (!%p461_p9)
}
  0x16   :  { %32 = dma.hbm_to_vmem [thread:$0]  %s565_s1, 2048, %s30_s15, [#allocation6]  }
  0x17   :  { %505 = dma.done.wait [#allocation3], 2048  }
  0x18   :  { %506 = vsyncadd [#allocation3], 4294965248 }
  0x19   :  { %507 = dma.done.wait [#allocation6], 2048  }
  0x1a   :  { %508 = vsyncadd [#allocation6], 4294965248  ;;  %v39_v0 = vld [vmem:[#allocation2] sm:$0xff]  ;;  %v40_v1 = vld [vmem:[#allocation2 + $0x8] sm:$0xff]  ;;  %s515_s0 = smov [#allocation7]  }
  0x1b   :  { %v41_v2 = vld [vmem:[#allocation2 + $0x10] sm:$0xff]  ;;  %v55_v3 = vmax.f32 %v39_v0, 1e-30  ;;  %v56_v4 = vmax.f32 %v40_v1, 1e-30  ;;  %v42_v6 = vld [vmem:[#allocation2 + $0x18] sm:$0xff] }
  0x1c   :  { %v57_v5 = vmax.f32 %v41_v2, 1e-30  ;;  %v43_v7 = vld [vmem:[#allocation2 + $0x20] sm:$0xff]  ;;  %v44_v8 = vld [vmem:[#allocation2 + $0x28] sm:$0xff]  ;;  %v58_v9 = vmax.f32 %v42_v6, 1e-30 }
  0x1d   :  { %329 = vlog2.f32 %v55_v3  ;;  %v59_v10 = vmax.f32 %v43_v7, 1e-30  ;;  %v60_v11 = vmax.f32 %v44_v8, 1e-30  ;;  %v45_v12 = vld [vmem:[#allocation2 + $0x30] sm:$0xff]  ;;  %v46_v13 = vld [vmem:[#allocation2 + $0x38] sm:$0xff] }
  0x1e   :  { %331 = vlog2.f32 %v56_v4  ;;  %v47_v14 = vld [vmem:[#allocation2 + $0x40] sm:$0xff]  ;;  %v61_v15 = vmax.f32 %v45_v12, 1e-30  ;;  %v62_v16 = vmax.f32 %v46_v13, 1e-30  ;;  %v48_v17 = vld [vmem:[#allocation2 + $0x48] sm:$0xff] }
  0x1f   :  { %333 = vlog2.f32 %v57_v5  ;;  %v49_v18 = vld [vmem:[#allocation2 + $0x50] sm:$0xff]  ;;  %v50_v19 = vld [vmem:[#allocation2 + $0x58] sm:$0xff]  ;;  %v63_v20 = vmax.f32 %v47_v14, 1e-30  ;;  %v64_v21 = vmax.f32 %v48_v17, 1e-30 }
  0x20   :  { %335 = vlog2.f32 %v58_v9  ;;  %v51_v22 = vld [vmem:[#allocation2 + $0x60] sm:$0xff]  ;;  %v52_v23 = vld [vmem:[#allocation2 + $0x68] sm:$0xff]  ;;  %v65_v24 = vmax.f32 %v49_v18, 1e-30  ;;  %v66_v25 = vmax.f32 %v50_v19, 1e-30 }
  0x21   :  { %337 = vlog2.f32 %v59_v10  ;;  %v53_v26 = vld [vmem:[#allocation2 + $0x70] sm:$0xff]  ;;  %v67_v27 = vmax.f32 %v51_v22, 1e-30  ;;  %v54_v28 = vld [vmem:[#allocation2 + $0x78] sm:$0xff]  ;;  %v199_v29 = vld [vmem:[#allocation5] sm:$0xff]  ;;  %s301_s1 = sshll.u32 %s515_s0, 4  ;;  %s302_s1 = int_to_ptr.vmem [resolvable:$true] %s301_s1 }
  0x22   :  { %339 = vlog2.f32 %v60_v11  ;;  %v200_v30 = vld [vmem:[#allocation5 + $0x8] sm:$0xff]  ;;  %v68_v31 = vmax.f32 %v52_v23, 1e-30  ;;  %v215_v32 = vmul.f32 5.9914646, %v199_v29  ;;  %v201_v35 = vld [vmem:[#allocation5 + $0x10] sm:$0xff]  ;;  %p470_p11 = scmp.lt.s32.totalorder %s302_s1, %s302_s1 }
  0x23   :  { %341 = vlog2.f32 %v61_v15  ;;  %v216_v33 = vmul.f32 5.9914646, %v200_v30  ;;  %v69_v34 = vmax.f32 %v53_v26, 1e-30  ;;  %v202_v36 = vld [vmem:[#allocation5 + $0x18] sm:$0xff]  ;;  %v203_v37 = vld [vmem:[#allocation5 + $0x20] sm:$0xff] }
  0x24   :  { %343 = vlog2.f32 %v62_v16  ;;  %v70_v38 = vmax.f32 %v54_v28, 1e-30  ;;  %v231_v39 = vmul.f32 1.442695, %v215_v32  ;;  %v217_v40 = vmul.f32 5.9914646, %v201_v35 }
  0x25   :  { %345 = vlog2.f32 %v63_v20  ;;  %v218_v41 = vmul.f32 5.9914646, %v202_v36  ;;  %v219_v42 = vmul.f32 5.9914646, %v203_v37  ;;  %v204_v43 = vld [vmem:[#allocation5 + $0x28] sm:$0xff]  ;;  %v205_v44 = vld [vmem:[#allocation5 + $0x30] sm:$0xff] }
  0x26   :  { %347 = vlog2.f32 %v64_v21  ;;  %v233_v45 = vmul.f32 1.442695, %v216_v33  ;;  %v220_v46 = vmul.f32 5.9914646, %v204_v43  ;;  %v221_v47 = vmul.f32 5.9914646, %v205_v44 }
  0x27   :  { %349 = vlog2.f32 %v65_v24  ;;  %v235_v49 = vmul.f32 1.442695, %v217_v40  ;;  %v237_v50 = vmul.f32 1.442695, %v218_v41  ;;  %v206_v51 = vld [vmem:[#allocation5 + $0x38] sm:$0xff]  ;;  %v207_v52 = vld [vmem:[#allocation5 + $0x40] sm:$0xff] }
  0x28   :  { %351 = vlog2.f32 %v66_v25  ;;  %v543_v55 = vmul.f32 1.442695, %v219_v42  ;;  %v545_v56 = vmul.f32 1.442695, %v220_v46  ;;  %v547_v59 = vmul.f32 1.442695, %v221_v47 }
  0x29   :  { %353 = vlog2.f32 %v67_v27  ;;  %v222_v60 = vmul.f32 5.9914646, %v206_v51  ;;  %v549_v0 = vmul.f32 5.9914646, %v207_v52  ;;  %s465_s22 = scalar_lea.vmem %s302_s1, 2048 }
  0x2a   :  { %v330_v48 = vpop.eup %329  ;;  %355 = vlog2.f32 %v68_v31  ;;  %p466_p10 = scmp.ne.s32.totalorder %s302_s1, %s465_s22  ;;  %p471_p12 = scmp.lt.s32.totalorder %s465_s22, %s465_s22 }
  0x2b   :  { %v332_v53 = vpop.eup %331  ;;  %v72_v54 = vmul.f32 0.6931472, %v330_v48  ;;  %357 = vlog2.f32 %v69_v34  ;;  %v551_v4 = vmul.f32 1.442695, %v222_v60 }
  0x2c   :  { %v334_v57 = vpop.eup %333  ;;  %v74_v58 = vmul.f32 0.6931472, %v332_v53  ;;  %359 = vlog2.f32 %v70_v38  ;;  %p472_p13 = por %p471_p12, %p470_p11 }
  0x2d   :  { %v336_v61 = vpop.eup %335  ;;  %v103_v62 = vmul.f32 2.3025851, %v72_v54  ;;  %v76_v63 = vmul.f32 0.6931472, %v334_v57  ;;  %361 = vpow2.f32 %v231_v39 }
  0x2e   :  { %v338_v1 = vpop.eup %337  ;;  %v104_v2 = vmul.f32 2.3025851, %v74_v58  ;;  %v78_v3 = vmul.f32 0.6931472, %v336_v61  ;;  %363 = vpow2.f32 %v233_v45  ;;  %v209_v61 = vld [vmem:[#allocation5 + $0x50] sm:$0xff]  ;;  %p473_p0 = pnand %p472_p13, %p466_p10 }
  0x2f   :  { %v340_v5 = vpop.eup %339  ;;  %v119_v6 = vmul.f32 1.442695, %v103_v62  ;;  %v105_v7 = vmul.f32 2.3025851, %v76_v63  ;;  %v80_v8 = vmul.f32 0.6931472, %v338_v1  ;;  %365 = vpow2.f32 %v235_v49 }
  0x30   :  { %v342_v9 = vpop.eup %341  ;;  %v121_v10 = vmul.f32 1.442695, %v104_v2  ;;  %v106_v11 = vmul.f32 2.3025851, %v78_v3  ;;  %v82_v12 = vmul.f32 0.6931472, %v340_v5  ;;  %367 = vpow2.f32 %v237_v50 }
  0x31   :  { %v344_v13 = vpop.eup %343  ;;  %369 = vpow2.f32 %v119_v6  ;;  %v123_v14 = vmul.f32 1.442695, %v105_v7  ;;  %v107_v15 = vmul.f32 2.3025851, %v80_v8  ;;  %v84_v16 = vmul.f32 0.6931472, %v342_v9 }
  0x32   :  { %v346_v17 = vpop.eup %345  ;;  %371 = vpow2.f32 %v121_v10  ;;  %v125_v18 = vmul.f32 1.442695, %v106_v11  ;;  %v108_v19 = vmul.f32 2.3025851, %v82_v12  ;;  %v86_v20 = vmul.f32 0.6931472, %v344_v13 }
  0x33   :  { %v348_v21 = vpop.eup %347  ;;  %373 = vpow2.f32 %v123_v14  ;;  %v127_v22 = vmul.f32 1.442695, %v107_v15  ;;  %v109_v23 = vmul.f32 2.3025851, %v84_v16  ;;  %v88_v24 = vmul.f32 0.6931472, %v346_v17 }
  0x34   :  { %v350_v25 = vpop.eup %349  ;;  %375 = vpow2.f32 %v125_v18  ;;  %v129_v26 = vmul.f32 1.442695, %v108_v19  ;;  %v110_v27 = vmul.f32 2.3025851, %v86_v20  ;;  %v90_v28 = vmul.f32 0.6931472, %v348_v21 }
  0x35   :  { %v352_v29 = vpop.eup %351  ;;  %377 = vpow2.f32 %v127_v22  ;;  %v131_v30 = vmul.f32 1.442695, %v109_v23  ;;  %v111_v31 = vmul.f32 2.3025851, %v88_v24  ;;  %v92_v32 = vmul.f32 0.6931472, %v350_v25 }
  0x36   :  { %v354_v33 = vpop.eup %353  ;;  %379 = vpow2.f32 %v129_v26  ;;  %v133_v34 = vmul.f32 1.442695, %v110_v27  ;;  %v112_v35 = vmul.f32 2.3025851, %v90_v28  ;;  %v94_v36 = vmul.f32 0.6931472, %v352_v29 }
  0x37   :  { %v356_v37 = vpop.eup %355  ;;  %381 = vpow2.f32 %v131_v30  ;;  %v135_v38 = vmul.f32 1.442695, %v111_v31  ;;  %v113_v39 = vmul.f32 2.3025851, %v92_v32  ;;  %v96_v40 = vmul.f32 0.6931472, %v354_v33 }
  0x38   :  { %v358_v41 = vpop.eup %357  ;;  %383 = vpow2.f32 %v133_v34  ;;  %v137_v42 = vmul.f32 1.442695, %v112_v35  ;;  %v114_v43 = vmul.f32 2.3025851, %v94_v36  ;;  %v98_v44 = vmul.f32 0.6931472, %v356_v37 }
  0x39   :  { %v360_v45 = vpop.eup %359  ;;  %385 = vpow2.f32 %v135_v38  ;;  %v139_v46 = vmul.f32 1.442695, %v113_v39  ;;  %v115_v47 = vmul.f32 2.3025851, %v96_v40  ;;  %v100_v48 = vmul.f32 0.6931472, %v358_v41 }
  0x3a   :  { %v208_v49 = vld [vmem:[#allocation5 + $0x48] sm:$0xff]  ;;  %v362_v50 = vpop.eup %361  ;;  %387 = vpow2.f32 %v137_v42  ;;  %v141_v51 = vmul.f32 1.442695, %v114_v43  ;;  %v116_v52 = vmul.f32 2.3025851, %v98_v44  ;;  %v210_v3 = vld [vmem:[#allocation5 + $0x58] sm:$0xff] }
  0x3b   :  { %v102_v53 = vmul.f32 0.6931472, %v360_v45  ;;  %v364_v54 = vpop.eup %363  ;;  %389 = vpow2.f32 %v139_v46  ;;  %v143_v57 = vmul.f32 1.442695, %v115_v47  ;;  %v117_v58 = vmul.f32 2.3025851, %v100_v48 }
  0x3c   :  { %v263_v60 = vmul.f32 20.0, %v362_v50  ;;  %v366_v62 = vpop.eup %365  ;;  %391 = vpow2.f32 %v141_v51  ;;  %v145_v63 = vmul.f32 1.442695, %v116_v52  ;;  %v264_v2 = vmul.f32 20.0, %v364_v54  ;;  %v211_v9 = vld [vmem:[#allocation5 + $0x60] sm:$0xff]  ;;  %v212_v25 = vld [vmem:[#allocation5 + $0x68] sm:$0xff] }
  0x3d   :  { %v118_v1 = vmul.f32 2.3025851, %v102_v53  ;;  %v368_v5 = vpop.eup %367  ;;  %393 = vpow2.f32 %v143_v57  ;;  %v147_v6 = vmul.f32 1.442695, %v117_v58  ;;  %v265_v7 = vmul.f32 20.0, %v366_v62  ;;  %v213_v30 = vld [vmem:[#allocation5 + $0x70] sm:$0xff] }
  0x3e   :  { %279 = vst [vmem:[#allocation8] sm:$0xff] %v263_v60  ;;  %v247_v8 = vmul.f32 1.442695, %v549_v0  ;;  %v370_v10 = vpop.eup %369  ;;  %395 = vpow2.f32 %v145_v63  ;;  %280 = vst [vmem:[#allocation8 + $0x8] sm:$0xff] %v264_v2  ;;  %v266_v12 = vmul.f32 20.0, %v368_v5  ;;  %v214_v41 = vld [vmem:[#allocation5 + $0x78] sm:$0xff] }
  0x3f   :  { %v149_v11 = vmul.f32 1.442695, %v118_v1  ;;  %v224_v13 = vmul.f32 5.9914646, %v208_v49  ;;  %v372_v14 = vpop.eup %371  ;;  %v151_v15 = vmul.f32 2.0, %v370_v10  ;;  %397 = vpow2.f32 %v147_v6  ;;  %281 = vst [vmem:[#allocation8 + $0x10] sm:$0xff] %v265_v7 }
  0x40   :  { %v225_v16 = vmul.f32 5.9914646, %v209_v61  ;;  %v226_v17 = vmul.f32 5.9914646, %v210_v3  ;;  %v374_v18 = vpop.eup %373  ;;  %v152_v19 = vmul.f32 2.0, %v372_v14  ;;  %282 = vst [vmem:[#allocation8 + $0x18] sm:$0xff] %v266_v12 }
  0x41   :  { %399 = vpow2.f32 %v149_v11  ;;  %v249_v20 = vmul.f32 1.442695, %v224_v13  ;;  %v227_v21 = vmul.f32 5.9914646, %v211_v9  ;;  %v376_v0 = vpop.eup %375  ;;  %v167_v22 = vadd.f32 1e-07, %v151_v15 }
  0x42   :  { %v153_v23 = vmul.f32 2.0, %v374_v18  ;;  %401 = vpow2.f32 %v543_v55  ;;  %v251_v24 = vmul.f32 1.442695, %v225_v16  ;;  %v378_v26 = vpop.eup %377  ;;  %v168_v27 = vadd.f32 1e-07, %v152_v19 }
  0x43   :  { %v154_v28 = vmul.f32 2.0, %v376_v0  ;;  %403 = vpow2.f32 %v545_v56  ;;  %v253_v29 = vmul.f32 1.442695, %v226_v17  ;;  %v380_v31 = vpop.eup %379  ;;  %183 = vst [vmem:[#allocation7] sm:$0xff] %v167_v22  ;;  %v155_v33 = vmul.f32 2.0, %v378_v26 }
  0x44   :  { %v169_v32 = vadd.f32 1e-07, %v153_v23  ;;  %405 = vpow2.f32 %v547_v59  ;;  %v255_v34 = vmul.f32 1.442695, %v227_v21  ;;  %v382_v35 = vpop.eup %381  ;;  %184 = vst [vmem:[#allocation7 + $0x8] sm:$0xff] %v168_v27  ;;  %v156_v55 = vmul.f32 2.0, %v380_v31 }
  0x45   :  { %v170_v36 = vadd.f32 1e-07, %v154_v28  ;;  %407 = vpow2.f32 %v551_v4  ;;  %v228_v37 = vmul.f32 5.9914646, %v212_v25  ;;  %v384_v38 = vpop.eup %383  ;;  %v171_v39 = vadd.f32 1e-07, %v155_v33 }
  0x46   :  { %185 = vst [vmem:[#allocation7 + $0x10] sm:$0xff] %v169_v32  ;;  %v157_v56 = vmul.f32 2.0, %v382_v35  ;;  %409 = vpow2.f32 %v247_v8  ;;  %v229_v40 = vmul.f32 5.9914646, %v213_v30  ;;  %v386_v42 = vpop.eup %385  ;;  %v172_v43 = vadd.f32 1e-07, %v156_v55 }
  0x47   :  { %186 = vst [vmem:[#allocation7 + $0x18] sm:$0xff] %v170_v36  ;;  %v158_v44 = vmul.f32 2.0, %v384_v38  ;;  %411 = vpow2.f32 %v249_v20  ;;  %v257_v59 = vmul.f32 1.442695, %v228_v37  ;;  %v388_v45 = vpop.eup %387  ;;  %187 = vst [vmem:[#allocation7 + $0x20] sm:$0xff] %v171_v39  ;;  %v159_v47 = vmul.f32 2.0, %v386_v42 }
  0x48   :  { %v173_v46 = vadd.f32 1e-07, %v157_v56  ;;  %413 = vpow2.f32 %v251_v24  ;;  %v259_v4 = vmul.f32 1.442695, %v229_v40  ;;  %v390_v48 = vpop.eup %389  ;;  %188 = vst [vmem:[#allocation7 + $0x28] sm:$0xff] %v172_v43  ;;  %v160_v50 = vmul.f32 2.0, %v388_v45 }
  0x49   :  { %v174_v49 = vadd.f32 1e-07, %v158_v44  ;;  %415 = vpow2.f32 %v253_v29  ;;  %v230_v51 = vmul.f32 5.9914646, %v214_v41  ;;  %v392_v52 = vpop.eup %391  ;;  %v175_v53 = vadd.f32 1e-07, %v159_v47 }
  0x4a   :  { %189 = vst [vmem:[#allocation7 + $0x30] sm:$0xff] %v173_v46  ;;  %v161_v54 = vmul.f32 2.0, %v390_v48  ;;  %417 = vpow2.f32 %v255_v34  ;;  %v394_v57 = vpop.eup %393  ;;  %v176_v58 = vadd.f32 1e-07, %v160_v50  ;;  %v162_v60 = vmul.f32 2.0, %v392_v52 }
  0x4b   :  { %190 = vst [vmem:[#allocation7 + $0x38] sm:$0xff] %v174_v49  ;;  %419 = vpow2.f32 %v257_v59  ;;  %v261_v61 = vmul.f32 1.442695, %v230_v51  ;;  %v396_v62 = vpop.eup %395  ;;  %191 = vst [vmem:[#allocation7 + $0x40] sm:$0xff] %v175_v53  ;;  %v163_v1 = vmul.f32 2.0, %v394_v57 }
  0x4c   :  { %v177_v63 = vadd.f32 1e-07, %v161_v54  ;;  %421 = vpow2.f32 %v259_v4  ;;  %v398_v2 = vpop.eup %397  ;;  %192 = vst [vmem:[#allocation7 + $0x48] sm:$0xff] %v176_v58  ;;  %v178_v3 = vadd.f32 1e-07, %v162_v60  ;;  %v164_v5 = vmul.f32 2.0, %v396_v62 }
  0x4d   :  { %423 = vpow2.f32 %v261_v61  ;;  %v179_v7 = vadd.f32 1e-07, %v163_v1  ;;  %v165_v8 = vmul.f32 2.0, %v398_v2 }
  0x4e   :  { %v400_v6 = vpop.eup %399  ;;  %193 = vst [vmem:[#allocation7 + $0x50] sm:$0xff] %v177_v63  ;;  %194 = vst [vmem:[#allocation7 + $0x58] sm:$0xff] %v178_v3  ;;  %v180_v10 = vadd.f32 1e-07, %v164_v5 }
  0x4f   :  { %v402_v9 = vpop.eup %401  ;;  %v166_v11 = vmul.f32 2.0, %v400_v6  ;;  %195 = vst [vmem:[#allocation7 + $0x60] sm:$0xff] %v179_v7  ;;  %v181_v13 = vadd.f32 1e-07, %v165_v8 }
  0x50   :  { %v404_v12 = vpop.eup %403  ;;  %v267_v14 = vmul.f32 20.0, %v402_v9  ;;  %196 = vst [vmem:[#allocation7 + $0x68] sm:$0xff] %v180_v10 }
  0x51   :  { %v406_v15 = vpop.eup %405  ;;  %v182_v16 = vadd.f32 1e-07, %v166_v11  ;;  %v268_v17 = vmul.f32 20.0, %v404_v12  ;;  %197 = vst [vmem:[#allocation7 + $0x70] sm:$0xff] %v181_v13 }
  0x52   :  { %v408_v18 = vpop.eup %407  ;;  %283 = vst [vmem:[#allocation8 + $0x20] sm:$0xff] %v267_v14  ;;  %v269_v19 = vmul.f32 20.0, %v406_v15 }
  0x53   :  { %v410_v20 = vpop.eup %409  ;;  %198 = vst [vmem:[#allocation7 + $0x78] sm:$0xff] %v182_v16  ;;  %284 = vst [vmem:[#allocation8 + $0x28] sm:$0xff] %v268_v17  ;;  %v270_v21 = vmul.f32 20.0, %v408_v18 }
  0x54   :  { %v412_v0 = vpop.eup %411  ;;  %285 = vst [vmem:[#allocation8 + $0x30] sm:$0xff] %v269_v19  ;;  %v271_v22 = vmul.f32 20.0, %v410_v20 }
  0x55   :  { %476 = shalt.err (!%p473_p0)
}
  0x56   :  { %304 = dma.vmem_to_hbm [thread:$0]  %s302_s1, 2048, %s566_s2, [#allocation4]   ;;  %v414_v23 = vpop.eup %413  ;;  %286 = vst [vmem:[#allocation8 + $0x38] sm:$0xff] %v270_v21  ;;  %v272_v24 = vmul.f32 20.0, %v412_v0  ;;  %287 = vst [vmem:[#allocation8 + $0x40] sm:$0xff] %v271_v22 }
  0x57   :  { %v416_v25 = vpop.eup %415  ;;  %v273_v26 = vmul.f32 20.0, %v414_v23  ;;  %s516_s25 = smov [#allocation8]  }
  0x58   :  { %v418_v27 = vpop.eup %417  ;;  %288 = vst [vmem:[#allocation8 + $0x48] sm:$0xff] %v272_v24  ;;  %v274_v28 = vmul.f32 20.0, %v416_v25  ;;  %s311_s26 = sshll.u32 %s516_s25, 4  ;;  %s312_s26 = int_to_ptr.vmem [resolvable:$true] %s311_s26 }
  0x59   :  { %v420_v29 = vpop.eup %419  ;;  %289 = vst [vmem:[#allocation8 + $0x50] sm:$0xff] %v273_v26  ;;  %v275_v30 = vmul.f32 20.0, %v418_v27  ;;  %s485_s2 = scalar_lea.vmem %s312_s26, 2048  ;;  %p490_p2 = scmp.lt.s32.totalorder %s312_s26, %s312_s26 }
  0x5a   :  { %v422_v31 = vpop.eup %421  ;;  %290 = vst [vmem:[#allocation8 + $0x58] sm:$0xff] %v274_v28  ;;  %v276_v32 = vmul.f32 20.0, %v420_v29  ;;  %p486_p1 = scmp.ne.s32.totalorder %s312_s26, %s485_s2  ;;  %p491_p3 = scmp.lt.s32.totalorder %s485_s2, %s485_s2 }
  0x5b   :  { %v424_v33 = vpop.eup %423  ;;  %291 = vst [vmem:[#allocation8 + $0x60] sm:$0xff] %v275_v30  ;;  %v277_v34 = vmul.f32 20.0, %v422_v31 }
  0x5c   :  { %292 = vst [vmem:[#allocation8 + $0x68] sm:$0xff] %v276_v32  ;;  %v278_v35 = vmul.f32 20.0, %v424_v33  ;;  %p492_p4 = por %p491_p3, %p490_p2 }
  0x5d   :  { %293 = vst [vmem:[#allocation8 + $0x70] sm:$0xff] %v277_v34 }
  0x5e   :  { %294 = vst [vmem:[#allocation8 + $0x78] sm:$0xff] %v278_v35  ;;  %p493_p5 = pnand %p492_p4, %p486_p1 }
  0x60   :  { %496 = shalt.err (!%p493_p5)
}
  0x61   :  { %314 = dma.vmem_to_hbm [thread:$0]  %s312_s26, 2048, %s567_s3, [#allocation9]  }
  0x62   :  { %509 = dma.done.wait [#allocation4], 2048  }
  0x63   :  { %510 = vsyncadd [#allocation4], 4294965248 }
  0x64   :  { %511 = dma.done.wait [#allocation9], 2048  }
  0x65   :  { %512 = vsyncadd [#allocation9], 4294965248 }
  0x66   :  { %321 = vsyncpa [#allocation3], 1 }
  0x67   :  { %322 = vsyncpa [#allocation6], 1 }
  0x68   :  { %323 = vsyncpa [#allocation4], 1 }
  0x69   :  { %324 = vsyncpa [#allocation9], 1 }

</bundles_post_ra>
